<compile_context>
chip_gen: v7x
topology: tpu7x:2x2x1
jax: 0.10.0
libtpu: 0.0.40
codegen_flags: <defaults>
</compile_context>

<pallas_src>
import math

import jax
import jax.numpy as jnp
from jax.experimental import pallas as pl
from jax.experimental.pallas import tpu as pltpu

LEAKY_SLOPE = 0.2
MATMUL_DTYPE = jnp.bfloat16   # MXU operand dtype; accumulation stays f32.


def _leaky(y):
    return jnp.where(y > 0, y, LEAKY_SLOPE * y)


def encoder_kernel(x_ref, adj_ref,
                   w1_ref, b1_ref,          # conv_first
                   wb_ref, bb_ref,          # stacked conv_block weights (L-2,H,H)/(L-2,1,H)
                   wl_ref, bl_ref,          # conv_last
                   wp1_ref, bp1_ref,        # proj_head linear 1
                   wp2_ref, bp2_ref,        # proj_head linear 2
                   x_out_ref, out_ref):
    x = x_ref[...]                                   # (B, N, Din) f32
    adj = jnp.maximum(adj_ref[...], 0.0)             # adj.clamp(min=0), f32

    # ---- shared symmetric adjacency normalization (identical for every GraphConv) ----
    # degree = sum(A + I, -1) + 1e-5 = sum(A, -1) + 1 + 1e-5  (always > 0, no inf fixup)
    degree = jnp.sum(adj, axis=-1) + (1.0 + 1e-5)    # (B, N) f32
    dis = jax.lax.rsqrt(degree)[:, :, None]          # (B, N, 1) f32
    # Only (B,N,N) tensor kept live across layers; bf16 MXU operand.
    adj_mx = adj.astype(MATMUL_DTYPE)

    def spmm(v):
        # D^-1/2 (A + I) D^-1/2 @ v  without materializing (A+I) or adj_norm.
        dv = v * dis                                                  # f32
        av = jnp.einsum('bij,bjd->bid', adj_mx, dv.astype(MATMUL_DTYPE),
                        preferred_element_type=jnp.float32)
        return (av + dv) * dis                                        # +I added in f32

    def gconv(h, w, b, activate, normalize):
        # y = D^-1/2 (A+I) D^-1/2 @ h @ W + b.  Contraction order chosen statically so
        # the N^2 adjacency contraction runs on the narrower feature width; the
        # feature matmul is flattened over B*N rows (single MXU op, not B tiny ones).
        Bh, Nh, Dh = h.shape
        Dout = w.shape[1]
        w_mx = w.astype(MATMUL_DTYPE)
        if Dout < Dh:
            hw = jnp.dot(h.reshape(Bh * Nh, Dh).astype(MATMUL_DTYPE), w_mx,
                         preferred_element_type=jnp.float32).reshape(Bh, Nh, Dout)
            y = spmm(hw)
        else:
            ah = spmm(h)
            y = jnp.dot(ah.reshape(Bh * Nh, Dh).astype(MATMUL_DTYPE), w_mx,
                        preferred_element_type=jnp.float32).reshape(Bh, Nh, Dout)
        # Fused epilogue on the f32 accumulator (VPU/EUP work while the MXU drains).
        y = y + b                                     # b: (1, Dout) broadcast
        if activate:
            y = _leaky(y)
        if normalize:
            # F.normalize(p=2, dim=-1) == y / max(||y||, 1e-12); clamp the SQUARED
            # norm at 1e-24 so a single rsqrt+mul (EUP slot) preserves the semantics.
            sumsq = jnp.sum(y * y, axis=-1, keepdims=True)
            y = y * jax.lax.rsqrt(jnp.maximum(sumsq, 1e-24))
        return y

    def batchnorm(h):
        # apply_bn builds a FRESH BatchNorm1d(num_nodes) in training mode:
        # biased batch stats per node channel over (batch, feature), gamma=1, beta=0.
        # Fused single pass: sum + sum-of-squares; variance clamped at 0 (cancellation).
        Bh, _, Dh = h.shape
        inv_cnt = 1.0 / (Bh * Dh)
        s = jnp.sum(h, axis=(0, 2), keepdims=True)
        sq = jnp.sum(h * h, axis=(0, 2), keepdims=True)
        mean = s * inv_cnt
        var = jnp.maximum(sq * inv_cnt - mean * mean, 0.0)
        return (h - mean) * jax.lax.rsqrt(var + 1e-5)

    # conv_first
    h = gconv(x, w1_ref[...], b1_ref[...], activate=True, normalize=True)
    h = batchnorm(h)

    # conv_block layers with residual (static unroll; block count is small)
    num_block = wb_ref.shape[0]                      # static (num_layers - 2)
    for i in range(num_block):
        res = h
        h = gconv(h, wb_ref[i], bb_ref[i], activate=True, normalize=True)
        h = batchnorm(h)
        h = h + res

    # conv_last (no activation, still L2-normalized)
    h = gconv(h, wl_ref[...], bl_ref[...], activate=False, normalize=True)
    x_out_ref[...] = h

    # max over nodes + projection head (tiny matmuls: kept f32)
    out = jnp.max(h, axis=1)                         # (B, emb)
    out = jnp.dot(out, wp1_ref[...], preferred_element_type=jnp.float32) + bp1_ref[...]
    out = _leaky(out)
    out = jnp.dot(out, wp2_ref[...], preferred_element_type=jnp.float32) + bp2_ref[...]
    out_ref[...] = out


def encoder_forward(x, adj, params):
    B, N, _ = x.shape
    emb = params['wl'].shape[1]
    args = (x, adj,
            params['w1'], params['b1'],
            params['wb'], params['bb'],
            params['wl'], params['bl'],
            params['wp1'], params['bp1'],
            params['wp2'], params['bp2'])
    out_shapes = (jax.ShapeDtypeStruct((B, N, emb), jnp.float32),
                  jax.ShapeDtypeStruct((B, emb), jnp.float32))

    # Explicit VMEM budget from the real operand footprint (inputs + outputs + headroom
    # for in-kernel intermediates), instead of the 16/32 MiB scoped default.
    # Capped at 64 MiB so it stays within v7x's physical per-core VMEM.
    arg_bytes = sum(int(a.size) * a.dtype.itemsize for a in args)
    out_bytes = sum(math.prod(s.shape) * 4 for s in out_shapes)
    vmem_limit = int(min(max(4 * (arg_bytes + out_bytes) + (4 << 20), 32 << 20), 64 << 20))

    # Grid-less call: whole arrays placed in VMEM exactly once (no double-buffering).
    # For large B/N this should become a node-block grid (parallel axis) — NOT a batch
    # grid, which would break BatchNorm's cross-batch statistics.
    vmem_spec = lambda: pl.BlockSpec(memory_space=pltpu.MemorySpace.VMEM)
    return pl.pallas_call(
        encoder_kernel,
        out_shape=out_shapes,
        in_specs=[vmem_spec() for _ in args],
        out_specs=(vmem_spec(), vmem_spec()),
        compiler_params=pltpu.CompilerParams(vmem_limit_bytes=vmem_limit),
    )(*args)


# ---------------- pure-JAX reference (for correctness check) ----------------
def encoder_reference(x, adj, params, matmul_dtype=jnp.float32):
    """Mirrors the PyTorch Encoder forward.

    matmul_dtype=float32 reproduces the original f32 semantics; passing
    MATMUL_DTYPE mirrors the kernel's bf16-operand / f32-accumulate matmuls
    (same cast points / contraction structure) for a tight numerical check.
    """
    adj = jnp.maximum(adj, 0.0)
    degree = jnp.sum(adj, axis=-1) + (1.0 + 1e-5)
    dis = jax.lax.rsqrt(degree)[:, :, None]
    adj_mx = adj.astype(matmul_dtype)

    def spmm(v):
        dv = v * dis
        av = jnp.einsum('bij,bjd->bid', adj_mx, dv.astype(matmul_dtype),
                        preferred_element_type=jnp.float32)
        return (av + dv) * dis

    def gconv(h, w, b, act, norm):
        Bh, Nh, Dh = h.shape
        Dout = w.shape[1]
        w_mx = w.astype(matmul_dtype)
        if Dout < Dh:
            hw = jnp.dot(h.reshape(Bh * Nh, Dh).astype(matmul_dtype), w_mx,
                         preferred_element_type=jnp.float32).reshape(Bh, Nh, Dout)
            y = spmm(hw)
        else:
            ah = spmm(h)
            y = jnp.dot(ah.reshape(Bh * Nh, Dh).astype(matmul_dtype), w_mx,
                        preferred_element_type=jnp.float32).reshape(Bh, Nh, Dout)
        y = y + b
        if act:
            y = _leaky(y)
        if norm:
            n = jnp.sqrt(jnp.sum(y * y, axis=-1, keepdims=True))
            y = y / jnp.maximum(n, 1e-12)
        return y

    def bn(h):
        m = jnp.mean(h, axis=(0, 2), keepdims=True)
        v = jnp.mean((h - m) ** 2, axis=(0, 2), keepdims=True)
        return (h - m) / jnp.sqrt(v + 1e-5)

    h = bn(gconv(x, params['w1'], params['b1'], True, True))
    for i in range(params['wb'].shape[0]):
        r = h
        h = bn(gconv(h, params['wb'][i], params['bb'][i], True, True)) + r
    h = gconv(h, params['wl'], params['bl'], False, True)
    out = jnp.max(h, axis=1)
    out = _leaky(out @ params['wp1'] + params['bp1'][0])
    out = out @ params['wp2'] + params['bp2'][0]
    return h, out


def make_params(key, input_dim, hidden_dim, embedding_dim, num_layers):
    gain = math.sqrt(2.0 / (1.0 + LEAKY_SLOPE ** 2))   # calculate_gain('leaky_relu', 0.2)
    ks = jax.random.split(key, 8)

    def xavier(k, fi, fo):
        bound = gain * math.sqrt(6.0 / (fi + fo))
        return jax.random.uniform(k, (fi, fo), jnp.float32, -bound, bound)

    def lin_w(k, fi, fo):
        bound = 1.0 / math.sqrt(fi)
        return jax.random.uniform(k, (fi, fo), jnp.float32, -bound, bound)

    def lin_b(k, fi, fo):
        bound = 1.0 / math.sqrt(fi)
        return jax.random.uniform(k, (1, fo), jnp.float32, -bound, bound)

    nblk = num_layers - 2
    wb = jnp.stack([xavier(k, hidden_dim, hidden_dim)
                    for k in jax.random.split(ks[1], nblk)], axis=0)
    return {
        'w1': xavier(ks[0], input_dim, hidden_dim),
        'b1': jnp.zeros((1, hidden_dim), jnp.float32),
        'wb': wb,
        'bb': jnp.zeros((nblk, 1, hidden_dim), jnp.float32),
        'wl': xavier(ks[2], hidden_dim, embedding_dim),
        'bl': jnp.zeros((1, embedding_dim), jnp.float32),
        'wp1': lin_w(ks[3], embedding_dim, embedding_dim),
        'bp1': lin_b(ks[4], embedding_dim, embedding_dim),
        'wp2': lin_w(ks[5], embedding_dim, embedding_dim),
        'bp2': lin_b(ks[6], embedding_dim, embedding_dim),
    }


if __name__ == "__main__":
    key = jax.random.PRNGKey(0)
    B, N = 2, 16
    input_dim, hidden_dim, embedding_dim, num_layers = 8, 32, 32, 3

    k_x, k_adj, k_p = jax.random.split(key, 3)
    x = jax.random.normal(k_x, (B, N, input_dim), jnp.float32)
    # mix of negative/positive entries so adj.clamp(min=0) is exercised
    adj = jax.random.uniform(k_adj, (B, N, N), jnp.float32, -0.5, 1.0)
    params = make_params(k_p, input_dim, hidden_dim, embedding_dim, num_layers)

    x_out, out = encoder_forward(x, adj, params)
    jax.block_until_ready((x_out, out))

    # Tight check vs a reference mirroring the kernel's bf16-operand / f32-accumulate math.
    x_mref, out_mref = encoder_reference(x, adj, params, matmul_dtype=MATMUL_DTYPE)
    assert jnp.allclose(x_out, x_mref, rtol=2e-3, atol=2e-3)
    assert jnp.allclose(out, out_mref, rtol=2e-3, atol=2e-3)

    # Looser sanity check vs the full-f32 reference (original PyTorch semantics).
    x_f32, out_f32 = encoder_reference(x, adj, params, matmul_dtype=jnp.float32)
    assert jnp.allclose(x_out, x_f32, rtol=3e-2, atol=3e-2)
    assert jnp.allclose(out, out_f32, rtol=3e-2, atol=3e-2)

    print("KERNEL_OK")
</pallas_src>

<mosaic_0001>
module attributes {stable_mosaic.version = 11 : i64} {
  func.func @encoder_kernel(%arg0: memref<2x16x8xf32, #tpu.memory_space<vmem>>, %arg1: memref<2x16x16xf32, #tpu.memory_space<vmem>>, %arg2: memref<8x32xf32, #tpu.memory_space<vmem>>, %arg3: memref<1x32xf32, #tpu.memory_space<vmem>>, %arg4: memref<1x32x32xf32, #tpu.memory_space<vmem>>, %arg5: memref<1x1x32xf32, #tpu.memory_space<vmem>>, %arg6: memref<32x32xf32, #tpu.memory_space<vmem>>, %arg7: memref<1x32xf32, #tpu.memory_space<vmem>>, %arg8: memref<32x32xf32, #tpu.memory_space<vmem>>, %arg9: memref<1x32xf32, #tpu.memory_space<vmem>>, %arg10: memref<32x32xf32, #tpu.memory_space<vmem>>, %arg11: memref<1x32xf32, #tpu.memory_space<vmem>>, %arg12: memref<2x16x32xf32, #tpu.memory_space<vmem>>, %arg13: memref<2x32xf32, #tpu.memory_space<vmem>>) attributes {dimension_semantics = [], scalar_prefetch = 0 : i64, scratch_operands = 0 : i64, tpu.core_type = #tpu.core_type<tc>} {
    %c0 = arith.constant 0 : index
    %c0_0 = arith.constant 0 : index
    %c0_1 = arith.constant 0 : index
    %0 = vector.load %arg0[%c0, %c0_0, %c0_1] : memref<2x16x8xf32, #tpu.memory_space<vmem>>, vector<2x16x8xf32>
    %c0_2 = arith.constant 0 : index
    %c0_3 = arith.constant 0 : index
    %c0_4 = arith.constant 0 : index
    %1 = vector.load %arg1[%c0_2, %c0_3, %c0_4] : memref<2x16x16xf32, #tpu.memory_space<vmem>>, vector<2x16x16xf32>
    %cst = arith.constant 0.000000e+00 : f32
    %2 = vector.broadcast %cst : f32 to vector<2x16x16xf32>
    %3 = arith.maximumf %1, %2 : vector<2x16x16xf32>
    %cst_5 = arith.constant dense<0.000000e+00> : vector<2x16xf32>
    %4 = vector.multi_reduction <add>, %3, %cst_5 [2] : vector<2x16x16xf32> to vector<2x16xf32>
    %cst_6 = arith.constant 1.000010e+00 : f32
    %5 = vector.broadcast %cst_6 : f32 to vector<2x16xf32>
    %6 = arith.addf %4, %5 : vector<2x16xf32>
    %7 = math.rsqrt %6 : vector<2x16xf32>
    %8 = vector.shape_cast %7 : vector<2x16xf32> to vector<2x16x1xf32>
    %9 = arith.truncf %3 : vector<2x16x16xf32> to vector<2x16x16xbf16>
    %c0_7 = arith.constant 0 : index
    %c0_8 = arith.constant 0 : index
    %10 = vector.load %arg2[%c0_7, %c0_8] : memref<8x32xf32, #tpu.memory_space<vmem>>, vector<8x32xf32>
    %c0_9 = arith.constant 0 : index
    %c0_10 = arith.constant 0 : index
    %11 = vector.load %arg3[%c0_9, %c0_10] : memref<1x32xf32, #tpu.memory_space<vmem>>, vector<1x32xf32>
    %12 = arith.truncf %10 : vector<8x32xf32> to vector<8x32xbf16>
    %13 = vector.broadcast %8 : vector<2x16x1xf32> to vector<2x16x8xf32>
    %14 = arith.mulf %0, %13 : vector<2x16x8xf32>
    %15 = arith.truncf %14 : vector<2x16x8xf32> to vector<2x16x8xbf16>
    "tpu.trace_start"() <{level = 10 : i32, message = "bij,bjd->bid"}> : () -> ()
    %cst_11 = arith.constant dense<0.000000e+00> : vector<2x16x8xf32>
    %16 = tpu.matmul %9, %15, %cst_11 {dimension_numbers = #tpu.dot_dimension_numbers<[2], [1], [1], [2], [0, 0, 0, 1, 1, 2], [0], [0]>} : vector<2x16x16xbf16>, vector<2x16x8xbf16>, vector<2x16x8xf32> -> vector<2x16x8xf32>
    "tpu.trace_stop"() : () -> ()
    %17 = arith.addf %16, %14 : vector<2x16x8xf32>
    %18 = vector.broadcast %8 : vector<2x16x1xf32> to vector<2x16x8xf32>
    %19 = arith.mulf %17, %18 : vector<2x16x8xf32>
    %20 = vector.shape_cast %19 : vector<2x16x8xf32> to vector<32x8xf32>
    %21 = arith.truncf %20 : vector<32x8xf32> to vector<32x8xbf16>
    %cst_12 = arith.constant dense<0.000000e+00> : vector<32x32xf32>
    %22 = tpu.matmul %21, %12, %cst_12 {dimension_numbers = #tpu.dot_dimension_numbers<[1], [0], [0], [1], [0, 0, 1, 1], [], []>} : vector<32x8xbf16>, vector<8x32xbf16>, vector<32x32xf32> -> vector<32x32xf32>
    %23 = vector.shape_cast %22 : vector<32x32xf32> to vector<2x16x32xf32>
    %24 = vector.shape_cast %11 : vector<1x32xf32> to vector<1x1x32xf32>
    %25 = vector.broadcast %24 : vector<1x1x32xf32> to vector<2x16x32xf32>
    %26 = arith.addf %23, %25 : vector<2x16x32xf32>
    %cst_13 = arith.constant 0.000000e+00 : f32
    %27 = vector.broadcast %cst_13 : f32 to vector<2x16x32xf32>
    %28 = arith.cmpf ogt, %26, %27 : vector<2x16x32xf32>
    %cst_14 = arith.constant 2.000000e-01 : f32
    %29 = vector.broadcast %cst_14 : f32 to vector<2x16x32xf32>
    %30 = arith.mulf %29, %26 : vector<2x16x32xf32>
    %31 = arith.select %28, %26, %30 : vector<2x16x32xi1>, vector<2x16x32xf32>
    %32 = arith.mulf %31, %31 : vector<2x16x32xf32>
    %cst_15 = arith.constant dense<0.000000e+00> : vector<2x16xf32>
    %33 = vector.multi_reduction <add>, %32, %cst_15 [2] : vector<2x16x32xf32> to vector<2x16xf32>
    %34 = vector.shape_cast %33 : vector<2x16xf32> to vector<2x16x1xf32>
    %cst_16 = arith.constant 1.000000e-24 : f32
    %35 = vector.broadcast %cst_16 : f32 to vector<2x16x1xf32>
    %36 = arith.maximumf %34, %35 : vector<2x16x1xf32>
    %37 = math.rsqrt %36 : vector<2x16x1xf32>
    %38 = vector.broadcast %37 : vector<2x16x1xf32> to vector<2x16x32xf32>
    %39 = arith.mulf %31, %38 : vector<2x16x32xf32>
    %cst_17 = arith.constant dense<0.000000e+00> : vector<16xf32>
    %40 = vector.multi_reduction <add>, %39, %cst_17 [0, 2] : vector<2x16x32xf32> to vector<16xf32>
    %41 = vector.shape_cast %40 : vector<16xf32> to vector<1x16x1xf32>
    %42 = arith.mulf %39, %39 : vector<2x16x32xf32>
    %cst_18 = arith.constant dense<0.000000e+00> : vector<16xf32>
    %43 = vector.multi_reduction <add>, %42, %cst_18 [0, 2] : vector<2x16x32xf32> to vector<16xf32>
    %44 = vector.shape_cast %43 : vector<16xf32> to vector<1x16x1xf32>
    %cst_19 = arith.constant 1.562500e-02 : f32
    %45 = vector.broadcast %cst_19 : f32 to vector<1x16x1xf32>
    %46 = arith.mulf %41, %45 : vector<1x16x1xf32>
    %cst_20 = arith.constant 1.562500e-02 : f32
    %47 = vector.broadcast %cst_20 : f32 to vector<1x16x1xf32>
    %48 = arith.mulf %44, %47 : vector<1x16x1xf32>
    %49 = arith.mulf %46, %46 : vector<1x16x1xf32>
    %50 = arith.subf %48, %49 : vector<1x16x1xf32>
    %cst_21 = arith.constant 0.000000e+00 : f32
    %51 = vector.broadcast %cst_21 : f32 to vector<1x16x1xf32>
    %52 = arith.maximumf %50, %51 : vector<1x16x1xf32>
    %53 = vector.broadcast %46 : vector<1x16x1xf32> to vector<2x16x32xf32>
    %54 = arith.subf %39, %53 : vector<2x16x32xf32>
    %cst_22 = arith.constant 9.99999974E-6 : f32
    %55 = vector.broadcast %cst_22 : f32 to vector<1x16x1xf32>
    %56 = arith.addf %52, %55 : vector<1x16x1xf32>
    %57 = math.rsqrt %56 : vector<1x16x1xf32>
    %58 = vector.broadcast %57 : vector<1x16x1xf32> to vector<2x16x32xf32>
    %59 = arith.mulf %54, %58 : vector<2x16x32xf32>
    %c0_23 = arith.constant 0 : index
    %c0_24 = arith.constant 0 : index
    %c0_25 = arith.constant 0 : index
    %60 = vector.load %arg4[%c0_23, %c0_24, %c0_25] : memref<1x32x32xf32, #tpu.memory_space<vmem>>, vector<1x32x32xf32>
    %61 = vector.shape_cast %60 : vector<1x32x32xf32> to vector<32x32xf32>
    %c0_26 = arith.constant 0 : index
    %c0_27 = arith.constant 0 : index
    %c0_28 = arith.constant 0 : index
    %62 = vector.load %arg5[%c0_26, %c0_27, %c0_28] : memref<1x1x32xf32, #tpu.memory_space<vmem>>, vector<1x1x32xf32>
    %63 = vector.shape_cast %62 : vector<1x1x32xf32> to vector<1x32xf32>
    %64 = arith.truncf %61 : vector<32x32xf32> to vector<32x32xbf16>
    %65 = vector.broadcast %8 : vector<2x16x1xf32> to vector<2x16x32xf32>
    %66 = arith.mulf %59, %65 : vector<2x16x32xf32>
    %67 = arith.truncf %66 : vector<2x16x32xf32> to vector<2x16x32xbf16>
    "tpu.trace_start"() <{level = 10 : i32, message = "bij,bjd->bid"}> : () -> ()
    %cst_29 = arith.constant dense<0.000000e+00> : vector<2x16x32xf32>
    %68 = tpu.matmul %9, %67, %cst_29 {dimension_numbers = #tpu.dot_dimension_numbers<[2], [1], [1], [2], [0, 0, 0, 1, 1, 2], [0], [0]>} : vector<2x16x16xbf16>, vector<2x16x32xbf16>, vector<2x16x32xf32> -> vector<2x16x32xf32>
    "tpu.trace_stop"() : () -> ()
    %69 = arith.addf %68, %66 : vector<2x16x32xf32>
    %70 = vector.broadcast %8 : vector<2x16x1xf32> to vector<2x16x32xf32>
    %71 = arith.mulf %69, %70 : vector<2x16x32xf32>
    %72 = vector.shape_cast %71 : vector<2x16x32xf32> to vector<32x32xf32>
    %73 = arith.truncf %72 : vector<32x32xf32> to vector<32x32xbf16>
    %cst_30 = arith.constant dense<0.000000e+00> : vector<32x32xf32>
    %74 = tpu.matmul %73, %64, %cst_30 {dimension_numbers = #tpu.dot_dimension_numbers<[1], [0], [0], [1], [0, 0, 1, 1], [], []>} : vector<32x32xbf16>, vector<32x32xbf16>, vector<32x32xf32> -> vector<32x32xf32>
    %75 = vector.shape_cast %74 : vector<32x32xf32> to vector<2x16x32xf32>
    %76 = vector.shape_cast %63 : vector<1x32xf32> to vector<1x1x32xf32>
    %77 = vector.broadcast %76 : vector<1x1x32xf32> to vector<2x16x32xf32>
    %78 = arith.addf %75, %77 : vector<2x16x32xf32>
    %cst_31 = arith.constant 0.000000e+00 : f32
    %79 = vector.broadcast %cst_31 : f32 to vector<2x16x32xf32>
    %80 = arith.cmpf ogt, %78, %79 : vector<2x16x32xf32>
    %cst_32 = arith.constant 2.000000e-01 : f32
    %81 = vector.broadcast %cst_32 : f32 to vector<2x16x32xf32>
    %82 = arith.mulf %81, %78 : vector<2x16x32xf32>
    %83 = arith.select %80, %78, %82 : vector<2x16x32xi1>, vector<2x16x32xf32>
    %84 = arith.mulf %83, %83 : vector<2x16x32xf32>
    %cst_33 = arith.constant dense<0.000000e+00> : vector<2x16xf32>
    %85 = vector.multi_reduction <add>, %84, %cst_33 [2] : vector<2x16x32xf32> to vector<2x16xf32>
    %86 = vector.shape_cast %85 : vector<2x16xf32> to vector<2x16x1xf32>
    %cst_34 = arith.constant 1.000000e-24 : f32
    %87 = vector.broadcast %cst_34 : f32 to vector<2x16x1xf32>
    %88 = arith.maximumf %86, %87 : vector<2x16x1xf32>
    %89 = math.rsqrt %88 : vector<2x16x1xf32>
    %90 = vector.broadcast %89 : vector<2x16x1xf32> to vector<2x16x32xf32>
    %91 = arith.mulf %83, %90 : vector<2x16x32xf32>
    %cst_35 = arith.constant dense<0.000000e+00> : vector<16xf32>
    %92 = vector.multi_reduction <add>, %91, %cst_35 [0, 2] : vector<2x16x32xf32> to vector<16xf32>
    %93 = vector.shape_cast %92 : vector<16xf32> to vector<1x16x1xf32>
    %94 = arith.mulf %91, %91 : vector<2x16x32xf32>
    %cst_36 = arith.constant dense<0.000000e+00> : vector<16xf32>
    %95 = vector.multi_reduction <add>, %94, %cst_36 [0, 2] : vector<2x16x32xf32> to vector<16xf32>
    %96 = vector.shape_cast %95 : vector<16xf32> to vector<1x16x1xf32>
    %cst_37 = arith.constant 1.562500e-02 : f32
    %97 = vector.broadcast %cst_37 : f32 to vector<1x16x1xf32>
    %98 = arith.mulf %93, %97 : vector<1x16x1xf32>
    %cst_38 = arith.constant 1.562500e-02 : f32
    %99 = vector.broadcast %cst_38 : f32 to vector<1x16x1xf32>
    %100 = arith.mulf %96, %99 : vector<1x16x1xf32>
    %101 = arith.mulf %98, %98 : vector<1x16x1xf32>
    %102 = arith.subf %100, %101 : vector<1x16x1xf32>
    %cst_39 = arith.constant 0.000000e+00 : f32
    %103 = vector.broadcast %cst_39 : f32 to vector<1x16x1xf32>
    %104 = arith.maximumf %102, %103 : vector<1x16x1xf32>
    %105 = vector.broadcast %98 : vector<1x16x1xf32> to vector<2x16x32xf32>
    %106 = arith.subf %91, %105 : vector<2x16x32xf32>
    %cst_40 = arith.constant 9.99999974E-6 : f32
    %107 = vector.broadcast %cst_40 : f32 to vector<1x16x1xf32>
    %108 = arith.addf %104, %107 : vector<1x16x1xf32>
    %109 = math.rsqrt %108 : vector<1x16x1xf32>
    %110 = vector.broadcast %109 : vector<1x16x1xf32> to vector<2x16x32xf32>
    %111 = arith.mulf %106, %110 : vector<2x16x32xf32>
    %112 = arith.addf %111, %59 : vector<2x16x32xf32>
    %c0_41 = arith.constant 0 : index
    %c0_42 = arith.constant 0 : index
    %113 = vector.load %arg6[%c0_41, %c0_42] : memref<32x32xf32, #tpu.memory_space<vmem>>, vector<32x32xf32>
    %c0_43 = arith.constant 0 : index
    %c0_44 = arith.constant 0 : index
    %114 = vector.load %arg7[%c0_43, %c0_44] : memref<1x32xf32, #tpu.memory_space<vmem>>, vector<1x32xf32>
    %115 = arith.truncf %113 : vector<32x32xf32> to vector<32x32xbf16>
    %116 = vector.broadcast %8 : vector<2x16x1xf32> to vector<2x16x32xf32>
    %117 = arith.mulf %112, %116 : vector<2x16x32xf32>
    %118 = arith.truncf %117 : vector<2x16x32xf32> to vector<2x16x32xbf16>
    "tpu.trace_start"() <{level = 10 : i32, message = "bij,bjd->bid"}> : () -> ()
    %cst_45 = arith.constant dense<0.000000e+00> : vector<2x16x32xf32>
    %119 = tpu.matmul %9, %118, %cst_45 {dimension_numbers = #tpu.dot_dimension_numbers<[2], [1], [1], [2], [0, 0, 0, 1, 1, 2], [0], [0]>} : vector<2x16x16xbf16>, vector<2x16x32xbf16>, vector<2x16x32xf32> -> vector<2x16x32xf32>
    "tpu.trace_stop"() : () -> ()
    %120 = arith.addf %119, %117 : vector<2x16x32xf32>
    %121 = vector.broadcast %8 : vector<2x16x1xf32> to vector<2x16x32xf32>
    %122 = arith.mulf %120, %121 : vector<2x16x32xf32>
    %123 = vector.shape_cast %122 : vector<2x16x32xf32> to vector<32x32xf32>
    %124 = arith.truncf %123 : vector<32x32xf32> to vector<32x32xbf16>
    %cst_46 = arith.constant dense<0.000000e+00> : vector<32x32xf32>
    %125 = tpu.matmul %124, %115, %cst_46 {dimension_numbers = #tpu.dot_dimension_numbers<[1], [0], [0], [1], [0, 0, 1, 1], [], []>} : vector<32x32xbf16>, vector<32x32xbf16>, vector<32x32xf32> -> vector<32x32xf32>
    %126 = vector.shape_cast %125 : vector<32x32xf32> to vector<2x16x32xf32>
    %127 = vector.shape_cast %114 : vector<1x32xf32> to vector<1x1x32xf32>
    %128 = vector.broadcast %127 : vector<1x1x32xf32> to vector<2x16x32xf32>
    %129 = arith.addf %126, %128 : vector<2x16x32xf32>
    %130 = arith.mulf %129, %129 : vector<2x16x32xf32>
    %cst_47 = arith.constant dense<0.000000e+00> : vector<2x16xf32>
    %131 = vector.multi_reduction <add>, %130, %cst_47 [2] : vector<2x16x32xf32> to vector<2x16xf32>
    %132 = vector.shape_cast %131 : vector<2x16xf32> to vector<2x16x1xf32>
    %cst_48 = arith.constant 1.000000e-24 : f32
    %133 = vector.broadcast %cst_48 : f32 to vector<2x16x1xf32>
    %134 = arith.maximumf %132, %133 : vector<2x16x1xf32>
    %135 = math.rsqrt %134 : vector<2x16x1xf32>
    %136 = vector.broadcast %135 : vector<2x16x1xf32> to vector<2x16x32xf32>
    %137 = arith.mulf %129, %136 : vector<2x16x32xf32>
    %c0_49 = arith.constant 0 : index
    %c0_50 = arith.constant 0 : index
    %c0_51 = arith.constant 0 : index
    %138 = vector.load %arg12[%c0_49, %c0_50, %c0_51] : memref<2x16x32xf32, #tpu.memory_space<vmem>>, vector<2x16x32xf32>
    tpu.vector_store %arg12[%c0_49, %c0_50, %c0_51], %137 {strides = array<i32>} : memref<2x16x32xf32, #tpu.memory_space<vmem>>, vector<2x16x32xf32>,
    %cst_52 = arith.constant dense<0xFF800000> : vector<2x32xf32>
    %139 = vector.multi_reduction <maximumf>, %137, %cst_52 [1] : vector<2x16x32xf32> to vector<2x32xf32>
    %c0_53 = arith.constant 0 : index
    %c0_54 = arith.constant 0 : index
    %140 = vector.load %arg8[%c0_53, %c0_54] : memref<32x32xf32, #tpu.memory_space<vmem>>, vector<32x32xf32>
    %cst_55 = arith.constant dense<0.000000e+00> : vector<2x32xf32>
    %141 = tpu.matmul %139, %140, %cst_55 {dimension_numbers = #tpu.dot_dimension_numbers<[1], [0], [0], [1], [0, 0, 1, 1], [], []>} : vector<2x32xf32>, vector<32x32xf32>, vector<2x32xf32> -> vector<2x32xf32>
    %c0_56 = arith.constant 0 : index
    %c0_57 = arith.constant 0 : index
    %142 = vector.load %arg9[%c0_56, %c0_57] : memref<1x32xf32, #tpu.memory_space<vmem>>, vector<1x32xf32>
    %143 = vector.broadcast %142 : vector<1x32xf32> to vector<2x32xf32>
    %144 = arith.addf %141, %143 : vector<2x32xf32>
    %cst_58 = arith.constant 0.000000e+00 : f32
    %145 = vector.broadcast %cst_58 : f32 to vector<2x32xf32>
    %146 = arith.cmpf ogt, %144, %145 : vector<2x32xf32>
    %cst_59 = arith.constant 2.000000e-01 : f32
    %147 = vector.broadcast %cst_59 : f32 to vector<2x32xf32>
    %148 = arith.mulf %147, %144 : vector<2x32xf32>
    %149 = arith.select %146, %144, %148 : vector<2x32xi1>, vector<2x32xf32>
    %c0_60 = arith.constant 0 : index
    %c0_61 = arith.constant 0 : index
    %150 = vector.load %arg10[%c0_60, %c0_61] : memref<32x32xf32, #tpu.memory_space<vmem>>, vector<32x32xf32>
    %cst_62 = arith.constant dense<0.000000e+00> : vector<2x32xf32>
    %151 = tpu.matmul %149, %150, %cst_62 {dimension_numbers = #tpu.dot_dimension_numbers<[1], [0], [0], [1], [0, 0, 1, 1], [], []>} : vector<2x32xf32>, vector<32x32xf32>, vector<2x32xf32> -> vector<2x32xf32>
    %c0_63 = arith.constant 0 : index
    %c0_64 = arith.constant 0 : index
    %152 = vector.load %arg11[%c0_63, %c0_64] : memref<1x32xf32, #tpu.memory_space<vmem>>, vector<1x32xf32>
    %153 = vector.broadcast %152 : vector<1x32xf32> to vector<2x32xf32>
    %154 = arith.addf %151, %153 : vector<2x32xf32>
    %c0_65 = arith.constant 0 : index
    %c0_66 = arith.constant 0 : index
    %155 = vector.load %arg13[%c0_65, %c0_66] : memref<2x32xf32, #tpu.memory_space<vmem>>, vector<2x32xf32>
    tpu.vector_store %arg13[%c0_65, %c0_66], %154 {strides = array<i32>} : memref<2x32xf32, #tpu.memory_space<vmem>>, vector<2x32xf32>,
    return
  }
}

</mosaic_0001>

<bundles_post_ra>
// kernel: tpu_custom_call.1
= control target key start
LH: loop header
LB: loop body
LE: loop exit
PB: predicated region body
PF: predicated region fallthrough
CT: control target
= control target key end

     0   :  { %19 = vsyncpa [#allocation3], 0  ;;  %s1761_s0 = inlined_call_operand.vmem [shape: f32[2,16,8], index: 0, kind: input, shape index: {}]   ;;  %s1762_s1 = inlined_call_operand.vmem [shape: f32[2,16,16], index: 1, kind: input, shape index: {}]   ;;  %s1763_s2 = inlined_call_operand.hbm [shape: f32[8,32], index: 2, kind: input, shape index: {}]   ;;  %s1764_s3 = inlined_call_operand.vmem [shape: f32[1,32], index: 3, kind: input, shape index: {}]   ;;  %s1765_s4 = inlined_call_operand.hbm [shape: f32[1,32,32], index: 4, kind: input, shape index: {}]   ;;  %s1766_s5 = inlined_call_operand.vmem [shape: f32[1,1,32], index: 5, kind: input, shape index: {}]   ;;  %s1767_s6 = inlined_call_operand.vmem [shape: f32[32,32], index: 6, kind: input, shape index: {}]   ;;  %s1768_s7 = inlined_call_operand.vmem [shape: f32[1,32], index: 7, kind: input, shape index: {}]   ;;  %s1769_s8 = inlined_call_operand.hbm [shape: f32[32,32], index: 8, kind: input, shape index: {}]   ;;  %s1770_s9 = inlined_call_operand.vmem [shape: f32[1,32], index: 9, kind: input, shape index: {}]   ;;  %s1771_s10 = inlined_call_operand.hbm [shape: f32[32,32], index: 10, kind: input, shape index: {}]   ;;  %s1772_s11 = inlined_call_operand.vmem [shape: f32[1,32], index: 11, kind: input, shape index: {}]   ;;  %s1773_s12 = inlined_call_operand.hbm [shape: f32[2,16,32], index: 12, kind: output, shape index: {0}]   ;;  %s1774_s13 = inlined_call_operand.hbm [shape: f32[2,32], index: 13, kind: output, shape index: {1}]  }
   0x1   :  { %20 = vsyncpa [#allocation6], 0 }
   0x2   :  { %21 = vsyncpa [#allocation9], 0 }
   0x3   :  { %22 = vsyncpa [#allocation4], 0 }
   0x4   :  { %23 = vsyncpa [#allocation12], 0  ;;  %s1413_s25 = smov [#allocation5]   ;;  %s1271_s29 = scalar_lea.hbm %s1765_s4, 512 }
   0x5   :  { %s45_s26 = sshll.u32 %s1413_s25, 4  ;;  %p1272_p0 = scmp.ne.s32.totalorder %s1765_s4, %s1271_s29  ;;  %s46_s26 = int_to_ptr.vmem [resolvable:$true] %s45_s26 }
   0x6   :  { %p1275_p1 = scmp.lt.u32.totalorder %s1271_s29, %s1765_s4 }
   0x8   :  { %p1277_p2 = pnand %p1275_p1, %p1272_p0 }
   0xa   :  { %1280 = shalt.err (!%p1277_p2)
}
   0xb   :  { %s1281_s17 = scalar_lea.vmem %s46_s26, 512  ;;  %p1286_p4 = scmp.lt.s32.totalorder %s46_s26, %s46_s26 }
   0xc   :  { %p1282_p3 = scmp.ne.s32.totalorder %s46_s26, %s1281_s17  ;;  %p1287_p5 = scmp.lt.s32.totalorder %s1281_s17, %s1281_s17 }
   0xe   :  { %p1288_p6 = por %p1287_p5, %p1286_p4 }
  0x10   :  { %p1289_p7 = pnand %p1288_p6, %p1282_p3 }
  0x12   :  { %1292 = shalt.err (!%p1289_p7)
}
  0x13   :  { %s1414_s18 = smov 128   ;;  %s1415_s19 = smov 8  }
  0x14   :  { %51 = dma.hbm_to_vmem [thread:$0]  %s1765_s4, 512, %s46_s26, [#allocation6], %s1414_s18, %s1414_s18, %s1415_s19  }
  0x15   :  { %s1416_s22 = smov [#allocation2]   ;;  %s1417_s24 = smov [#allocation7]  }
  0x16   :  { %s34_s23 = sshll.u32 %s1416_s22, 4  ;;  %s63_s25 = sshll.u32 %s1417_s24, 4  ;;  %s35_s23 = int_to_ptr.vmem [resolvable:$true] %s34_s23  ;;  %s64_s25 = int_to_ptr.vmem [resolvable:$true] %s63_s25 }
  0x17   :  { %s1293_s29 = scalar_lea.hbm %s1763_s2, 128 }
  0x18   :  { %p1294_p8 = scmp.ne.s32.totalorder %s1763_s2, %s1293_s29  ;;  %p1297_p9 = scmp.lt.u32.totalorder %s1293_s29, %s1763_s2 }
  0x1a   :  { %p1299_p10 = pnand %p1297_p9, %p1294_p8 }
  0x1c   :  { %1302 = shalt.err (!%p1299_p10)
}
  0x1d   :  { %s1303_s4 = scalar_lea.vmem %s35_s23, 128  ;;  %p1308_p12 = scmp.lt.s32.totalorder %s35_s23, %s35_s23 }
  0x1e   :  { %p1304_p11 = scmp.ne.s32.totalorder %s35_s23, %s1303_s4  ;;  %p1309_p13 = scmp.lt.s32.totalorder %s1303_s4, %s1303_s4 }
  0x20   :  { %p1310_p0 = por %p1309_p13, %p1308_p12 }
  0x22   :  { %p1311_p1 = pnand %p1310_p0, %p1304_p11 }
  0x24   :  { %1314 = shalt.err (!%p1311_p1)
}
  0x25   :  { %37 = dma.hbm_to_vmem [thread:$0]  %s1763_s2, 128, %s35_s23, [#allocation3]  }
  0x26   :  { %s1315_s22 = scalar_lea.hbm %s1769_s8, 512 }
  0x27   :  { %p1316_p2 = scmp.ne.s32.totalorder %s1769_s8, %s1315_s22  ;;  %p1319_p3 = scmp.lt.u32.totalorder %s1315_s22, %s1769_s8 }
  0x29   :  { %p1321_p4 = pnand %p1319_p3, %p1316_p2 }
  0x2b   :  { %1324 = shalt.err (!%p1321_p4)
}
  0x2c   :  { %s1325_s30 = scalar_lea.vmem %s64_s25, 512  ;;  %p1330_p6 = scmp.lt.s32.totalorder %s64_s25, %s64_s25 }
  0x2d   :  { %p1326_p5 = scmp.ne.s32.totalorder %s64_s25, %s1325_s30  ;;  %p1331_p7 = scmp.lt.s32.totalorder %s1325_s30, %s1325_s30 }
  0x2f   :  { %p1332_p8 = por %p1331_p7, %p1330_p6 }
  0x31   :  { %p1333_p9 = pnand %p1332_p8, %p1326_p5 }
  0x33   :  { %1336 = shalt.err (!%p1333_p9)
}
  0x34   :  { %69 = dma.hbm_to_vmem [thread:$0]  %s1769_s8, 512, %s64_s25, [#allocation6], %s1414_s18, %s1414_s18, %s1415_s19  }
  0x35   :  { %s1418_s14 = smov [#allocation8]   ;;  %s1337_s26 = scalar_lea.hbm %s1771_s10, 512 }
  0x36   :  { %s77_s15 = sshll.u32 %s1418_s14, 4  ;;  %p1338_p10 = scmp.ne.s32.totalorder %s1771_s10, %s1337_s26  ;;  %s78_s15 = int_to_ptr.vmem [resolvable:$true] %s77_s15 }
  0x37   :  { %p1341_p11 = scmp.lt.u32.totalorder %s1337_s26, %s1771_s10 }
  0x39   :  { %p1343_p12 = pnand %p1341_p11, %p1338_p10 }
  0x3b   :  { %1346 = shalt.err (!%p1343_p12)
}
  0x3c   :  { %s1347_s24 = scalar_lea.vmem %s78_s15, 512  ;;  %p1352_p0 = scmp.lt.s32.totalorder %s78_s15, %s78_s15 }
  0x3d   :  { %p1348_p13 = scmp.ne.s32.totalorder %s78_s15, %s1347_s24  ;;  %p1353_p1 = scmp.lt.s32.totalorder %s1347_s24, %s1347_s24 }
  0x3f   :  { %p1354_p2 = por %p1353_p1, %p1352_p0 }
  0x41   :  { %p1355_p3 = pnand %p1354_p2, %p1348_p13 }
  0x43   :  { %1358 = shalt.err (!%p1355_p3)
}
  0x44   :  { %83 = dma.hbm_to_vmem [thread:$0]  %s1771_s10, 512, %s78_s15, [#allocation9], %s1414_s18, %s1414_s18, %s1415_s19  }
  0x45   :  { %1403 = dma.done.wait [#allocation3], 128  }
  0x46   :  { %1404 = vsyncadd [#allocation3], 4294967168 }
  0x47   :  { %1405 = dma.done.wait [#allocation6], 1024  }
  0x48   :  { %1406 = vsyncadd [#allocation6], 4294966272 }
  0x49   :  { %1407 = dma.done.wait [#allocation9], 512  }
  0x4a   :  { %1408 = vsyncadd [#allocation9], 4294966784  ;;  %v105_v0 = vld [vmem:[%s1762_s1 + $0x10] sm:$0xff]  ;;  %vm111_vm0 = vcmask 130048   ;;  %v103_v1 = vld [vmem:[%s1762_s1] sm:$0xff]  ;;  %v1419_v14 = vmov 0.0  }
  0x4b   :  { %v106_v2 = vld [vmem:[%s1762_s1 + $0x18] sm:$0xff]  ;;  %v109_v3 = vmax.f32 %v105_v0, 0.0  ;;  %v107_v4 = vmax.f32 %v103_v1, 0.0  ;;  %v104_v6 = vld [vmem:[%s1762_s1 + $0x8] sm:$0xff]  ;;  %1127 = vmatprep.subr.bf16.mxu0 %v1419_v14  ;;  %1133 = vmatprep.subr.bf16.mxu1 %v1419_v14  ;;  %vm1420_vm1 = vmmov 0   ;;  %v101_v24 = vld [vmem:[%s1761_s0 + $0x10] sm:$0xff] }
  0x4c   :  { %v110_v5 = vmax.f32 %v106_v2, 0.0  ;;  %v108_v7 = vmax.f32 %v104_v6, 0.0  ;;  %1129 = vmatprep.mubr.msk.bf16.mxu0 %vm1420_vm1, %v1419_v14  ;;  %1135 = vmatprep.mubr.msk.bf16.mxu1 %vm1420_vm1, %v1419_v14  ;;  %v102_v25 = vld [vmem:[%s1761_s0 + $0x18] sm:$0xff]  ;;  %v99_v27 = vld [vmem:[%s1761_s0] sm:$0xff]  ;;  %v100_v28 = vld [vmem:[%s1761_s0 + $0x8] sm:$0xff]  ;;  %vm244_vm2 = vcmask 1043456  }
  0x4d   :  { %v118_v8 = vsel %vm111_vm0, %v109_v3, 0.0  ;;  %v112_v9 = vsel %vm111_vm0, %v107_v4, 0.0  ;;  %v134_v37 = vld [vmem:[#allocation2] sm:$0xff]  ;;  %vm237_vm3 = vcmask 64512   ;;  %vm323_vm7 = vcmask 261120   ;;  %s1422_s14 = smov [#allocation10]  }
  0x4e   :  { %v1565_v10 = vpack.c.bf16 %v110_v5, %v109_v3  ;;  %119 = vadd.xlane.f32.xlu1 %v118_v8  ;;  %113 = vadd.xlane.f32.xlu0 %v112_v9  ;;  %v1567_v11 = vpack.c.bf16 %v108_v7, %v107_v4  ;;  %v121_v12 = vsel %vm111_vm0, %v110_v5, 0.0  ;;  %v115_v13 = vsel %vm111_vm0, %v108_v7, 0.0  ;;  %v1079_v58 = vld [vmem:[%s1764_s3] ss:$0 sm:$0xff]  ;;  %s1047_s1 = sshll.u32 %s1422_s14, 4  ;;  %s1048_s1 = int_to_ptr.vmem [resolvable:$true] %s1047_s1 }
  0x4f   :  { %v136_v38 = vpack.c.bf16 %v134_v37, %v134_v37  ;;  %vm879_vm13 = vcmask 1041409   ;;  %s1359_s15 = scalar_lea.vmem %s1048_s1, 512  ;;  %p1364_p5 = scmp.lt.s32.totalorder %s1048_s1, %s1048_s1 }
  0x50   :  { %p1360_p4 = scmp.ne.s32.totalorder %s1048_s1, %s1359_s15  ;;  %p1365_p6 = scmp.lt.s32.totalorder %s1359_s15, %s1359_s15 }
  0x51   :  { %v246_v39 = vsel %vm244_vm2, %v136_v38, 0 }
  0x52   :  { %122 = vadd.xlane.f32.xlu1 %v121_v12  ;;  %116 = vadd.xlane.f32.xlu0 %v115_v13  ;;  %p1366_p7 = por %p1365_p6, %p1364_p5 }
  0x54   :  { %p1367_p8 = pnand %p1366_p7, %p1360_p4 }
  0xdb   :  { %v120_v15 = vpop.xlane.xlu1 %119  ;;  %v114_v16 = vpop.xlane.xlu0 %113 }
  0xdc   :  { %v126_v17 = vadd.f32 1.00001, %v120_v15  ;;  %v124_v18 = vadd.f32 1.00001, %v114_v16 }
  0xde   :  { %1231 = vrsqrt.f32 %v126_v17 }
  0xdf   :  { %v123_v19 = vpop.xlane.xlu1 %122  ;;  %v117_v20 = vpop.xlane.xlu0 %116  ;;  %1233 = vrsqrt.f32 %v124_v18 }
  0xe0   :  { %v127_v21 = vadd.f32 1.00001, %v123_v19  ;;  %v125_v22 = vadd.f32 1.00001, %v117_v20 }
  0xe2   :  { %1235 = vrsqrt.f32 %v127_v21 }
  0xe3   :  { %1237 = vrsqrt.f32 %v125_v22 }
  0xe8   :  { %v1577_v23 = vpop.eup %1231 }
  0xe9   :  { %v1585_v26 = vpop.eup %1233  ;;  %v139_v31 = vmul.f32 %v1577_v23, %v101_v24 }
  0xea   :  { %v137_v33 = vmul.f32 %v1585_v26, %v99_v27 }
  0xec   :  { %v1593_v29 = vpop.eup %1235 }
  0xed   :  { %v1595_v30 = vpop.eup %1237  ;;  %v140_v32 = vmul.f32 %v1593_v29, %v102_v25 }
  0xee   :  { %v138_v34 = vmul.f32 %v1595_v30, %v100_v28 }
  0xef   :  { %v142_v35 = vpack.c.bf16 %v140_v32, %v139_v31 }
  0xf0   :  { %v141_v36 = vpack.c.bf16 %v138_v34, %v137_v33 }
  0xf1   :  { %1134 = vmatpush3.bf16.msra.mxu1 %v142_v35 }
  0xf2   :  { %1128 = vmatpush3.bf16.msra.mxu0 %v141_v36  ;;  %1145 = vmatprep.subr.bf16.mxu1 %v1419_v14 }
  0xf3   :  { %1219 = vmatprep.subr.msk.bf16.mxu0 %vm244_vm2, %v136_v38 }
  0xf4   :  { %1136 = vmatmul.mubr.msk.bf16.vlgmr.msra.gmra.mrb[0].mxu1 %vm111_vm0, %v1565_v10 }
  0xf5   :  { %1130 = vmatmul.mubr.msk.bf16.vlgmr.msra.gmra.mrb[0].mxu0 %vm111_vm0, %v1567_v11  ;;  %1147 = vmatprep.mubr.msk.bf16.mxu1 %vm1420_vm1, %v1419_v14 }
  0xf6   :  { %1140 = vmatpush3.bf16.msra.mxu0 %v246_v39 }
  0xf7   :  { %1151 = vmatprep.subr.bf16.mxu0 %v1419_v14 }
 0x1c7   :  { %v224_v40 = vpop.f32.mrb[0].mxu1 }
 0x1c8   :  { %v180_v41 = vpop.f32.mrb[0].mxu0  ;;  %v225_v42 = vadd.f32 %v224_v40, %v139_v31  ;;  %v1137_v43 = vpop.f32.mrb[1].mxu1 }
 0x1c9   :  { %v181_v44 = vadd.f32 %v180_v41, %v137_v33  ;;  %v1131_v45 = vpop.f32.mrb[1].mxu0  ;;  %v227_v46 = vpop.f32.mrb[2].mxu1 }
 0x1ca   :  { %v183_v47 = vpop.f32.mrb[2].mxu0  ;;  %v228_v48 = vadd.f32 %v227_v46, %v140_v32  ;;  %v1138_v49 = vpop.f32.mrb[3].mxu1  ;;  %v233_v52 = vmul.f32 %v1577_v23, %v225_v42 }
 0x1cb   :  { %v184_v50 = vadd.f32 %v183_v47, %v138_v34  ;;  %v1132_v51 = vpop.f32.mrb[3].mxu0  ;;  %v231_v54 = vmul.f32 %v1585_v26, %v181_v44 }
 0x1cc   :  { %v234_v53 = vmul.f32 %v1593_v29, %v228_v48 }
 0x1cd   :  { %v232_v55 = vmul.f32 %v1595_v30, %v184_v50 }
 0x1ce   :  { %v236_v56 = vpack.c.bf16 %v234_v53, %v233_v52 }
 0x1cf   :  { %v235_v57 = vpack.c.bf16 %v232_v55, %v231_v54 }
 0x1d1   :  { %1141 = vmatprep.mubr.msk.bf16.mxu0 %vm237_vm3, %v235_v57 }
 0x1d2   :  { %1142 = vmatmul.mubr.msk.bf16.vlgmr.msra.gmra.mrb[4].mxu0 %vm237_vm3, %v236_v56 }
 0x1d3   :  { %1153 = vmatprep.mubr.msk.bf16.mxu0 %vm1420_vm1, %v1419_v14 }
 0x2a5   :  { %v1143_v59 = vpop.f32.mrb[4].mxu0 }
 0x2a6   :  { %v305_v60 = vadd.f32 %v1143_v59, %v1079_v58  ;;  %v282_v61 = vpop.f32.mrb[5].mxu0 }
 0x2a7   :  { %v303_v62 = vadd.f32 %v1079_v58, %v282_v61  ;;  %v1144_v63 = vpop.f32.mrb[6].mxu0 }
 0x2a8   :  { %vm309_vm4 = vcmp.gt.f32.partialorder %v305_v60, 0.0  ;;  %v313_v0 = vmul.f32 0.2, %v305_v60  ;;  %v306_v1 = vadd.f32 %v1144_v63, %v1079_v58  ;;  %v285_v2 = vpop.f32.mrb[7].mxu0 }
 0x2a9   :  { %vm307_vm5 = vcmp.gt.f32.partialorder %v303_v62, 0.0  ;;  %v311_v3 = vmul.f32 0.2, %v303_v62  ;;  %v304_v4 = vadd.f32 %v1079_v58, %v285_v2 }
 0x2aa   :  { %vm310_vm6 = vcmp.gt.f32.partialorder %v306_v1, 0.0  ;;  %v314_v5 = vmul.f32 0.2, %v306_v1  ;;  %v317_v8 = vsel %vm309_vm4, %v305_v60, %v313_v0 }
 0x2ab   :  { %vm308_vm8 = vcmp.gt.f32.partialorder %v304_v4, 0.0  ;;  %v312_v6 = vmul.f32 0.2, %v304_v4  ;;  %v315_v7 = vsel %vm307_vm5, %v303_v62, %v311_v3  ;;  %v321_v17 = vmul.f32 %v317_v8, %v317_v8 }
 0x2ac   :  { %v319_v9 = vmul.f32 %v315_v7, %v315_v7  ;;  %v318_v13 = vsel %vm310_vm6, %v306_v1, %v314_v5 }
 0x2ad   :  { %v316_v12 = vsel %vm308_vm8, %v304_v4, %v312_v6  ;;  %v322_v19 = vmul.f32 %v318_v13, %v318_v13  ;;  %v330_v20 = vsel %vm323_vm7, %v321_v17, 0.0 }
 0x2ae   :  { %v324_v15 = vsel %vm323_vm7, %v319_v9, 0.0  ;;  %v320_v16 = vmul.f32 %v316_v12, %v316_v12 }
 0x2af   :  { %325 = vadd.xlane.f32.xlu0 %v324_v15  ;;  %v333_v21 = vsel %vm323_vm7, %v322_v19, 0.0 }
 0x2b0   :  { %v327_v18 = vsel %vm323_vm7, %v320_v16, 0.0 }
 0x2b1   :  { %328 = vadd.xlane.f32.xlu1 %v327_v18 }
 0x2b3   :  { %331 = vadd.xlane.f32.xlu0 %v330_v20 }
 0x2b5   :  { %334 = vadd.xlane.f32.xlu1 %v333_v21 }
 0x33c   :  { %v326_v22 = vpop.xlane.xlu0 %325 }
 0x33d   :  { %v336_v24 = vmax.f32 %v326_v22, 1e-24 }
 0x33e   :  { %v329_v25 = vpop.xlane.xlu1 %328 }
 0x33f   :  { %1239 = vrsqrt.f32 %v336_v24  ;;  %v337_v27 = vmax.f32 %v329_v25, 1e-24 }
 0x340   :  { %v332_v28 = vpop.xlane.xlu0 %331 }
 0x341   :  { %1241 = vrsqrt.f32 %v337_v27  ;;  %v338_v31 = vmax.f32 %v332_v28, 1e-24 }
 0x342   :  { %v335_v32 = vpop.xlane.xlu1 %334 }
 0x343   :  { %1243 = vrsqrt.f32 %v338_v31  ;;  %v339_v33 = vmax.f32 %v335_v32, 1e-24 }
 0x345   :  { %1245 = vrsqrt.f32 %v339_v33  ;;  %v394_v33 = vld [vmem:[#allocation5] sm:$0xff] }
 0x349   :  { %v1240_v34 = vpop.eup %1239 }
 0x34a   :  { %v344_v36 = vmul.f32 %v1240_v34, %v315_v7  ;;  %v395_v34 = vld [vmem:[#allocation5 + $0x8] sm:$0xff] }
 0x34b   :  { %v1242_v35 = vpop.eup %1241 }
 0x34c   :  { %v345_v38 = vmul.f32 %v1242_v35, %v316_v12  ;;  %v348_v41 = vsel %vm323_vm7, %v344_v36, 0.0  ;;  %v358_v44 = vmul.f32 %v344_v36, %v344_v36  ;;  %v399_v35 = vpack.c.bf16 %v395_v34, %v394_v33 }
 0x34d   :  { %v1244_v37 = vpop.eup %1243 }
 0x34e   :  { %v346_v39 = vmul.f32 %v1244_v37, %v317_v8  ;;  %v353_v47 = vsel %vm323_vm7, %v345_v38, 0.0  ;;  %v359_v50 = vmul.f32 %v345_v38, %v345_v38  ;;  %v362_v53 = vsel %vm323_vm7, %v358_v44, 0.0  ;;  %v397_v37 = vld [vmem:[#allocation5 + $0x18] sm:$0xff] }
 0x34f   :  { %v1246_v40 = vpop.eup %1245 }
 0x350   :  { %v349_v42 = vsel %vm323_vm7, %v346_v39, 0.0  ;;  %v347_v43 = vmul.f32 %v1246_v40, %v318_v13  ;;  %v360_v45 = vmul.f32 %v346_v39, %v346_v39  ;;  %v367_v56 = vsel %vm323_vm7, %v359_v50, 0.0 }
 0x351   :  { %v350_v46 = vadd.f32 %v349_v42, %v348_v41 }
 0x352   :  { %v354_v48 = vsel %vm323_vm7, %v347_v43, 0.0  ;;  %v363_v49 = vsel %vm323_vm7, %v360_v45, 0.0  ;;  %v361_v51 = vmul.f32 %v347_v43, %v347_v43 }
 0x353   :  { %351 = vadd.xlane.f32.xlu0 %v350_v46  ;;  %v355_v52 = vadd.f32 %v354_v48, %v353_v47  ;;  %v364_v55 = vadd.f32 %v363_v49, %v362_v53 }
 0x354   :  { %v368_v54 = vsel %vm323_vm7, %v361_v51, 0.0 }
 0x355   :  { %356 = vadd.xlane.f32.xlu1 %v355_v52  ;;  %v369_v57 = vadd.f32 %v368_v54, %v367_v56 }
 0x357   :  { %365 = vadd.xlane.f32.xlu0 %v364_v55 }
 0x359   :  { %370 = vadd.xlane.f32.xlu1 %v369_v57  ;;  %v1084_v57 = vld [vmem:[%s1766_s5] ss:$0 sm:$0xff] }
 0x3e0   :  { %v352_v58 = vpop.xlane.xlu0 %351 }
 0x3e1   :  { %v372_v59 = vmul.f32 0.015625, %v352_v58 }
 0x3e2   :  { %v357_v60 = vpop.xlane.xlu1 %356 }
 0x3e3   :  { %v373_v61 = vmul.f32 0.015625, %v357_v60  ;;  %v376_v63 = vmul.f32 %v372_v59, %v372_v59  ;;  %v382_v12 = vsub.f32 %v344_v36, %v372_v59  ;;  %v384_v13 = vsub.f32 %v346_v39, %v372_v59  ;;  %v396_v36 = vld [vmem:[#allocation5 + $0x10] sm:$0xff] }
 0x3e4   :  { %v366_v62 = vpop.xlane.xlu0 %365 }
 0x3e5   :  { %v374_v0 = vmul.f32 0.015625, %v366_v62  ;;  %v377_v3 = vmul.f32 %v373_v61, %v373_v61  ;;  %v383_v16 = vsub.f32 %v345_v38, %v373_v61  ;;  %v385_v17 = vsub.f32 %v347_v43, %v373_v61 }
 0x3e6   :  { %v371_v1 = vpop.xlane.xlu1 %370  ;;  %v400_v38 = vpack.c.bf16 %v397_v37, %v396_v36 }
 0x3e7   :  { %v378_v2 = vsub.f32 %v374_v0, %v376_v63  ;;  %v375_v4 = vmul.f32 0.015625, %v371_v1 }
 0x3e9   :  { %v380_v5 = vmax.f32 %v378_v2, 0.0  ;;  %v379_v6 = vsub.f32 %v375_v4, %v377_v3 }
 0x3eb   :  { %v386_v7 = vadd.f32 1e-05, %v380_v5  ;;  %v381_v8 = vmax.f32 %v379_v6, 0.0 }
 0x3ed   :  { %1247 = vrsqrt.f32 %v386_v7  ;;  %v387_v9 = vadd.f32 1e-05, %v381_v8 }
 0x3ef   :  { %1249 = vrsqrt.f32 %v387_v9 }
 0x3f7   :  { %v1248_v15 = vpop.eup %1247 }
 0x3f8   :  { %v1630_v18 = vmul.f32 %v1248_v15, %v382_v12  ;;  %v1632_v19 = vmul.f32 %v1248_v15, %v384_v13 }
 0x3f9   :  { %v1250_v20 = vpop.eup %1249 }
 0x3fa   :  { %v1634_v21 = vmul.f32 %v1250_v20, %v383_v16  ;;  %v1636_v22 = vmul.f32 %v1250_v20, %v385_v17  ;;  %v401_v24 = vmul.f32 %v1585_v26, %v1630_v18  ;;  %v403_v27 = vmul.f32 %v1577_v23, %v1632_v19 }
 0x3fc   :  { %v402_v25 = vmul.f32 %v1595_v30, %v1634_v21  ;;  %v404_v28 = vmul.f32 %v1593_v29, %v1636_v22 }
 0x3fe   :  { %v405_v31 = vpack.c.bf16 %v402_v25, %v401_v24  ;;  %v406_v32 = vpack.c.bf16 %v404_v28, %v403_v27 }
 0x400   :  { %1146 = vmatpush3.bf16.msra.mxu1 %v405_v31  ;;  %1152 = vmatpush3.bf16.msra.mxu0 %v406_v32 }
 0x401   :  { %1165 = vmatprep.subr.bf16.mxu0 %v1419_v14  ;;  %1157 = vmatprep.subr.bf16.mxu1 %v399_v35 }
 0x403   :  { %1148 = vmatmul.mubr.msk.bf16.vlgmr.msra.gmra.mrb[4].mxu1 %vm111_vm0, %v1567_v11  ;;  %1154 = vmatmul.mubr.msk.bf16.vlgmr.msra.gmra.mrb[8].mxu0 %vm111_vm0, %v1565_v10 }
 0x404   :  { %1167 = vmatprep.mubr.msk.bf16.mxu0 %vm1420_vm1, %v1419_v14  ;;  %1158 = vmatpush3.bf16.msra.mxu1 %v399_v35 }
 0x405   :  { %1159 = vmatprep.subr.bf16.mxu1 %v400_v38 }
 0x408   :  { %1160 = vmatpush3.bf16.msra.mxu1 %v400_v38 }
 0x409   :  { %1171 = vmatprep.subr.bf16.mxu1 %v1419_v14 }
 0x4d6   :  { %v441_v39 = vpop.f32.mrb[4].mxu1  ;;  %v482_v40 = vpop.f32.mrb[8].mxu0 }
 0x4d7   :  { %v442_v41 = vadd.f32 %v441_v39, %v401_v24  ;;  %v483_v42 = vadd.f32 %v482_v40, %v403_v27  ;;  %v1149_v43 = vpop.f32.mrb[5].mxu1  ;;  %v1155_v44 = vpop.f32.mrb[9].mxu0 }
 0x4d8   :  { %v444_v45 = vpop.f32.mrb[6].mxu1  ;;  %v485_v46 = vpop.f32.mrb[10].mxu0 }
 0x4d9   :  { %v445_v47 = vadd.f32 %v444_v45, %v402_v25  ;;  %v486_v48 = vadd.f32 %v485_v46, %v404_v28  ;;  %v1150_v49 = vpop.f32.mrb[7].mxu1  ;;  %v1156_v50 = vpop.f32.mrb[11].mxu0  ;;  %v489_v51 = vmul.f32 %v1585_v26, %v442_v41  ;;  %v491_v52 = vmul.f32 %v1577_v23, %v483_v42 }
 0x4db   :  { %v490_v53 = vmul.f32 %v1595_v30, %v445_v47  ;;  %v492_v54 = vmul.f32 %v1593_v29, %v486_v48 }
 0x4dd   :  { %v493_v55 = vpack.c.bf16 %v490_v53, %v489_v51  ;;  %v494_v56 = vpack.c.bf16 %v492_v54, %v491_v52 }
 0x4df   :  { %1161 = vmatprep.mubr.msk.bf16.mxu1 %vm323_vm7, %v493_v55 }
 0x4e0   :  { %1162 = vmatmul.mubr.msk.bf16.vlgmr.msra.gmra.mrb[8].mxu1 %vm323_vm7, %v494_v56 }
 0x4e1   :  { %1173 = vmatprep.mubr.msk.bf16.mxu1 %vm1420_vm1, %v1419_v14 }
 0x5b3   :  { %v1163_v58 = vpop.f32.mrb[8].mxu1 }
 0x5b4   :  { %v558_v59 = vadd.f32 %v1163_v58, %v1084_v57  ;;  %v535_v60 = vpop.f32.mrb[9].mxu1 }
 0x5b5   :  { %v556_v61 = vadd.f32 %v1084_v57, %v535_v60  ;;  %v1164_v62 = vpop.f32.mrb[10].mxu1 }
 0x5b6   :  { %vm562_vm9 = vcmp.gt.f32.partialorder %v558_v59, 0.0  ;;  %v566_v63 = vmul.f32 0.2, %v558_v59  ;;  %v559_v0 = vadd.f32 %v1164_v62, %v1084_v57  ;;  %v538_v1 = vpop.f32.mrb[11].mxu1 }
 0x5b7   :  { %vm560_vm10 = vcmp.gt.f32.partialorder %v556_v61, 0.0  ;;  %v564_v2 = vmul.f32 0.2, %v556_v61  ;;  %v557_v3 = vadd.f32 %v1084_v57, %v538_v1 }
 0x5b8   :  { %vm563_vm11 = vcmp.gt.f32.partialorder %v559_v0, 0.0  ;;  %v567_v4 = vmul.f32 0.2, %v559_v0  ;;  %v570_v7 = vsel %vm562_vm9, %v558_v59, %v566_v63 }
 0x5b9   :  { %vm561_vm12 = vcmp.gt.f32.partialorder %v557_v3, 0.0  ;;  %v565_v5 = vmul.f32 0.2, %v557_v3  ;;  %v568_v6 = vsel %vm560_vm10, %v556_v61, %v564_v2  ;;  %v574_v16 = vmul.f32 %v570_v7, %v570_v7 }
 0x5ba   :  { %v572_v8 = vmul.f32 %v568_v6, %v568_v6  ;;  %v571_v12 = vsel %vm563_vm11, %v559_v0, %v567_v4 }
 0x5bb   :  { %v569_v9 = vsel %vm561_vm12, %v557_v3, %v565_v5  ;;  %v575_v20 = vmul.f32 %v571_v12, %v571_v12  ;;  %v582_v24 = vsel %vm323_vm7, %v574_v16, 0.0 }
 0x5bc   :  { %v576_v13 = vsel %vm323_vm7, %v572_v8, 0.0  ;;  %v573_v15 = vmul.f32 %v569_v9, %v569_v9 }
 0x5bd   :  { %577 = vadd.xlane.f32.xlu0 %v576_v13  ;;  %v585_v25 = vsel %vm323_vm7, %v575_v20, 0.0 }
 0x5be   :  { %v579_v17 = vsel %vm323_vm7, %v573_v15, 0.0 }
 0x5bf   :  { %580 = vadd.xlane.f32.xlu1 %v579_v17 }
 0x5c1   :  { %583 = vadd.xlane.f32.xlu0 %v582_v24 }
 0x5c3   :  { %586 = vadd.xlane.f32.xlu1 %v585_v25 }
 0x64a   :  { %v578_v27 = vpop.xlane.xlu0 %577 }
 0x64b   :  { %v588_v28 = vmax.f32 %v578_v27, 1e-24 }
 0x64c   :  { %v581_v31 = vpop.xlane.xlu1 %580 }
 0x64d   :  { %1251 = vrsqrt.f32 %v588_v28  ;;  %v589_v32 = vmax.f32 %v581_v31, 1e-24 }
 0x64e   :  { %v584_v33 = vpop.xlane.xlu0 %583 }
 0x64f   :  { %1253 = vrsqrt.f32 %v589_v32  ;;  %v590_v34 = vmax.f32 %v584_v33, 1e-24 }
 0x650   :  { %v587_v35 = vpop.xlane.xlu1 %586 }
 0x651   :  { %1255 = vrsqrt.f32 %v590_v34  ;;  %v591_v36 = vmax.f32 %v587_v35, 1e-24 }
 0x653   :  { %1257 = vrsqrt.f32 %v591_v36 }
 0x657   :  { %v1252_v37 = vpop.eup %1251 }
 0x658   :  { %v596_v39 = vmul.f32 %v1252_v37, %v568_v6 }
 0x659   :  { %v1254_v38 = vpop.eup %1253 }
 0x65a   :  { %v597_v41 = vmul.f32 %v1254_v38, %v569_v9  ;;  %v600_v44 = vsel %vm323_vm7, %v596_v39, 0.0  ;;  %v610_v47 = vmul.f32 %v596_v39, %v596_v39 }
 0x65b   :  { %v1256_v40 = vpop.eup %1255 }
 0x65c   :  { %v598_v42 = vmul.f32 %v1256_v40, %v570_v7  ;;  %v605_v50 = vsel %vm323_vm7, %v597_v41, 0.0  ;;  %v611_v53 = vmul.f32 %v597_v41, %v597_v41  ;;  %v614_v56 = vsel %vm323_vm7, %v610_v47, 0.0 }
 0x65d   :  { %v1258_v43 = vpop.eup %1257 }
 0x65e   :  { %v601_v45 = vsel %vm323_vm7, %v598_v42, 0.0  ;;  %v599_v46 = vmul.f32 %v1258_v43, %v571_v12  ;;  %v612_v48 = vmul.f32 %v598_v42, %v598_v42  ;;  %v619_v59 = vsel %vm323_vm7, %v611_v53, 0.0 }
 0x65f   :  { %v602_v49 = vadd.f32 %v601_v45, %v600_v44 }
 0x660   :  { %v606_v51 = vsel %vm323_vm7, %v599_v46, 0.0  ;;  %v615_v52 = vsel %vm323_vm7, %v612_v48, 0.0  ;;  %v613_v54 = vmul.f32 %v599_v46, %v599_v46 }
 0x661   :  { %603 = vadd.xlane.f32.xlu0 %v602_v49  ;;  %v607_v55 = vadd.f32 %v606_v51, %v605_v50  ;;  %v616_v58 = vadd.f32 %v615_v52, %v614_v56 }
 0x662   :  { %v620_v57 = vsel %vm323_vm7, %v613_v54, 0.0 }
 0x663   :  { %608 = vadd.xlane.f32.xlu1 %v607_v55  ;;  %v621_v60 = vadd.f32 %v620_v57, %v619_v59 }
 0x665   :  { %617 = vadd.xlane.f32.xlu0 %v616_v58 }
 0x667   :  { %622 = vadd.xlane.f32.xlu1 %v621_v60 }
 0x6ee   :  { %v604_v61 = vpop.xlane.xlu0 %603 }
 0x6ef   :  { %v624_v62 = vmul.f32 0.015625, %v604_v61 }
 0x6f0   :  { %v609_v63 = vpop.xlane.xlu1 %608 }
 0x6f1   :  { %v625_v0 = vmul.f32 0.015625, %v609_v63  ;;  %v628_v2 = vmul.f32 %v624_v62, %v624_v62  ;;  %v634_v16 = vsub.f32 %v596_v39, %v624_v62  ;;  %v636_v17 = vsub.f32 %v598_v42, %v624_v62  ;;  %v1089_v62 = vld [vmem:[%s1768_s7] ss:$0 sm:$0xff] }
 0x6f2   :  { %v618_v1 = vpop.xlane.xlu0 %617 }
 0x6f3   :  { %v626_v3 = vmul.f32 0.015625, %v618_v1  ;;  %v629_v6 = vmul.f32 %v625_v0, %v625_v0  ;;  %v635_v24 = vsub.f32 %v597_v41, %v625_v0  ;;  %v637_v25 = vsub.f32 %v599_v46, %v625_v0 }
 0x6f4   :  { %v623_v4 = vpop.xlane.xlu1 %622 }
 0x6f5   :  { %v630_v5 = vsub.f32 %v626_v3, %v628_v2  ;;  %v627_v7 = vmul.f32 0.015625, %v623_v4 }
 0x6f7   :  { %v632_v8 = vmax.f32 %v630_v5, 0.0  ;;  %v631_v9 = vsub.f32 %v627_v7, %v629_v6 }
 0x6f9   :  { %v638_v12 = vadd.f32 1e-05, %v632_v8  ;;  %v633_v13 = vmax.f32 %v631_v9, 0.0 }
 0x6fb   :  { %1259 = vrsqrt.f32 %v638_v12  ;;  %v639_v15 = vadd.f32 1e-05, %v633_v13  ;;  %v866_v12 = vld [vmem:[#allocation7] sm:$0xff]  ;;  %v867_v13 = vld [vmem:[#allocation7 + $0x8] sm:$0xff] }
 0x6fd   :  { %1261 = vrsqrt.f32 %v639_v15  ;;  %v868_v15 = vld [vmem:[#allocation7 + $0x10] sm:$0xff] }
 0x705   :  { %v1260_v20 = vpop.eup %1259 }
 0x706   :  { %v642_v27 = vmul.f32 %v1260_v20, %v634_v16  ;;  %v644_v28 = vmul.f32 %v1260_v20, %v636_v17  ;;  %v1421_v16 = vmov 0.0|0.0   ;;  %v1208_v17 = vpack.c.bf16 %v867_v13, %v866_v12  ;;  %v869_v20 = vld [vmem:[#allocation7 + $0x18] sm:$0xff] }
 0x707   :  { %v1262_v31 = vpop.eup %1261 }
 0x708   :  { %v643_v32 = vmul.f32 %v1262_v31, %v635_v24  ;;  %v646_v33 = vadd.f32 %v642_v27, %v1630_v18  ;;  %v645_v34 = vmul.f32 %v1262_v31, %v637_v25  ;;  %v648_v35 = vadd.f32 %v644_v28, %v1632_v19  ;;  %v650_v18 = vld [vmem:[%s1767_s6] sm:$0xff]  ;;  %v651_v19 = vld [vmem:[%s1767_s6 + $0x8] sm:$0xff]  ;;  %v957_v27 = vld [vmem:[#allocation8 + $0x8] sm:$0xff] }
 0x709   :  { %v1211_v24 = vpack.c.bf16 %v869_v20, %v868_v15  ;;  %v956_v25 = vld [vmem:[#allocation8] sm:$0xff] }
 0x70a   :  { %v647_v36 = vadd.f32 %v643_v32, %v1634_v21  ;;  %v649_v37 = vadd.f32 %v645_v34, %v1636_v22  ;;  %v657_v38 = vmul.f32 %v1585_v26, %v646_v33  ;;  %v659_v40 = vmul.f32 %v1577_v23, %v648_v35 }
 0x70b   :  { %v655_v21 = vpack.c.bf16 %v651_v19, %v650_v18  ;;  %v1214_v28 = vpack.c.bf16 %v957_v27, %v956_v25 }
 0x70c   :  { %v658_v39 = vmul.f32 %v1595_v30, %v647_v36  ;;  %v660_v41 = vmul.f32 %v1593_v29, %v649_v37 }
 0x70e   :  { %v661_v42 = vpack.c.bf16 %v658_v39, %v657_v38  ;;  %v662_v43 = vpack.c.bf16 %v660_v41, %v659_v40 }
 0x710   :  { %1166 = vmatpush3.bf16.msra.mxu0 %v661_v42  ;;  %1172 = vmatpush3.bf16.msra.mxu1 %v662_v43 }
 0x711   :  { %1177 = vmatprep.subr.bf16.mxu0 %v655_v21  ;;  %1207 = vmatprep.subr.bf16.mxu1 %v1421_v16 }
 0x713   :  { %1168 = vmatmul.mubr.msk.bf16.vlgmr.msra.gmra.mrb[12].mxu0 %vm111_vm0, %v1567_v11  ;;  %1174 = vmatmul.mubr.msk.bf16.vlgmr.msra.gmra.mrb[12].mxu1 %vm111_vm0, %v1565_v10  ;;  %v652_v11 = vld [vmem:[%s1767_s6 + $0x10] sm:$0xff]  ;;  %v653_v10 = vld [vmem:[%s1767_s6 + $0x18] sm:$0xff] }
 0x714   :  { %1193 = vmatprep.mubr.msk.f32.mxu1 %vm1420_vm1, %v1419_v14  ;;  %1178 = vmatpush3.bf16.msra.mxu0 %v655_v21  ;;  %v656_v22 = vpack.c.bf16 %v653_v10, %v652_v11 }
 0x715   :  { %1209 = vmatpush3.bf16.msra.mxu1 %v1208_v17 }
 0x716   :  { %1179 = vmatprep.subr.bf16.mxu0 %v656_v22  ;;  %1210 = vmatprep.subr.bf16.mxu1 %v1421_v16 }
 0x718   :  { %1180 = vmatpush3.bf16.msra.mxu0 %v656_v22 }
 0x719   :  { %1213 = vmatprep.subr.bf16.mxu0 %v1421_v16  ;;  %1212 = vmatpush3.bf16.msra.mxu1 %v1211_v24 }
 0x7e6   :  { %v697_v44 = vpop.f32.mrb[12].mxu0  ;;  %v738_v45 = vpop.f32.mrb[12].mxu1 }
 0x7e7   :  { %v698_v46 = vadd.f32 %v697_v44, %v657_v38  ;;  %v739_v47 = vadd.f32 %v738_v45, %v659_v40  ;;  %v1169_v48 = vpop.f32.mrb[13].mxu0  ;;  %v1175_v49 = vpop.f32.mrb[13].mxu1 }
 0x7e8   :  { %v700_v50 = vpop.f32.mrb[14].mxu0  ;;  %v741_v51 = vpop.f32.mrb[14].mxu1 }
 0x7e9   :  { %v701_v52 = vadd.f32 %v700_v50, %v658_v39  ;;  %v742_v53 = vadd.f32 %v741_v51, %v660_v41  ;;  %v1170_v54 = vpop.f32.mrb[15].mxu0  ;;  %v1176_v55 = vpop.f32.mrb[15].mxu1  ;;  %v745_v56 = vmul.f32 %v1585_v26, %v698_v46  ;;  %v747_v57 = vmul.f32 %v1577_v23, %v739_v47 }
 0x7eb   :  { %v746_v58 = vmul.f32 %v1595_v30, %v701_v52  ;;  %v748_v59 = vmul.f32 %v1593_v29, %v742_v53 }
 0x7ed   :  { %v749_v60 = vpack.c.bf16 %v746_v58, %v745_v56  ;;  %v750_v61 = vpack.c.bf16 %v748_v59, %v747_v57 }
 0x7ef   :  { %1181 = vmatprep.mubr.msk.bf16.mxu0 %vm323_vm7, %v749_v60  ;;  %v958_v60 = vld [vmem:[#allocation8 + $0x10] sm:$0xff] }
 0x7f0   :  { %1182 = vmatmul.mubr.msk.bf16.vlgmr.msra.gmra.mrb[16].mxu0 %vm323_vm7, %v750_v61  ;;  %v959_v61 = vld [vmem:[#allocation8 + $0x18] sm:$0xff] }
 0x7f1   :  { %1204 = vmatprep.mubr.msk.f32.mxu0 %vm1420_vm1, %v1419_v14  ;;  %1215 = vmatpush3.bf16.msra.mxu0 %v1214_v28 }
 0x7f2   :  { %1216 = vmatprep.subr.bf16.mxu0 %v1421_v16 }
 0x8c3   :  { %v1183_v26 = vpop.f32.mrb[16].mxu0 }
 0x8c4   :  { %v791_v63 = vpop.f32.mrb[17].mxu0  ;;  %v814_v23 = vadd.f32 %v1183_v26, %v1089_v62  ;;  %v1090_v26 = vld [vmem:[%s1770_s9] ss:$0 sm:$0xff] }
 0x8c5   :  { %v812_v0 = vadd.f32 %v1089_v62, %v791_v63  ;;  %v1184_v30 = vpop.f32.mrb[18].mxu0 }
 0x8c6   :  { %v794_v1 = vpop.f32.mrb[19].mxu0  ;;  %v815_v29 = vadd.f32 %v1184_v30, %v1089_v62  ;;  %v818_v6 = vmul.f32 %v814_v23, %v814_v23 }
 0x8c7   :  { %v813_v2 = vadd.f32 %v1089_v62, %v794_v1  ;;  %v816_v3 = vmul.f32 %v812_v0, %v812_v0  ;;  %v1217_v62 = vpack.c.bf16 %v959_v61, %v958_v60 }
 0x8c8   :  { %v819_v7 = vmul.f32 %v815_v29, %v815_v29  ;;  %v826_v8 = vsel %vm323_vm7, %v818_v6, 0.0 }
 0x8c9   :  { %v820_v4 = vsel %vm323_vm7, %v816_v3, 0.0  ;;  %v817_v5 = vmul.f32 %v813_v2, %v813_v2  ;;  %1218 = vmatpush3.bf16.msra.mxu0 %v1217_v62 }
 0x8ca   :  { %821 = vadd.xlane.f32.xlu0 %v820_v4  ;;  %v829_v9 = vsel %vm323_vm7, %v819_v7, 0.0 }
 0x8cb   :  { %v823_v14 = vsel %vm323_vm7, %v817_v5, 0.0 }
 0x8cc   :  { %824 = vadd.xlane.f32.xlu1 %v823_v14 }
 0x8ce   :  { %827 = vadd.xlane.f32.xlu0 %v826_v8 }
 0x8d0   :  { %830 = vadd.xlane.f32.xlu1 %v829_v9 }
 0x957   :  { %v822_v31 = vpop.xlane.xlu0 %821 }
 0x958   :  { %v832_v32 = vmax.f32 %v822_v31, 1e-24 }
 0x959   :  { %v825_v33 = vpop.xlane.xlu1 %824 }
 0x95a   :  { %1263 = vrsqrt.f32 %v832_v32  ;;  %v833_v34 = vmax.f32 %v825_v33, 1e-24 }
 0x95b   :  { %v828_v35 = vpop.xlane.xlu0 %827 }
 0x95c   :  { %1265 = vrsqrt.f32 %v833_v34  ;;  %v834_v36 = vmax.f32 %v828_v35, 1e-24 }
 0x95d   :  { %v831_v37 = vpop.xlane.xlu1 %830 }
 0x95e   :  { %1267 = vrsqrt.f32 %v834_v36  ;;  %v835_v38 = vmax.f32 %v831_v37, 1e-24 }
 0x960   :  { %1269 = vrsqrt.f32 %v835_v38 }
 0x964   :  { %v1264_v39 = vpop.eup %1263 }
 0x965   :  { %v840_v40 = vmul.f32 %v1264_v39, %v812_v0 }
 0x966   :  { %v1266_v41 = vpop.eup %1265 }
 0x967   :  { %844 = vst.msk [vmem:[#allocation10] sm:$0xff] %vm323_vm7, %v840_v40  ;;  %v841_v42 = vmul.f32 %v1266_v41, %v813_v2  ;;  %v848_v18 = vsel %vm323_vm7, %v840_v40, -inf }
 0x968   :  { %v1268_v43 = vpop.eup %1267 }
 0x969   :  { %v849_v19 = vsel %vm323_vm7, %v841_v42, -inf  ;;  %845 = vst.msk [vmem:[#allocation10 + $0x8] sm:$0xff] %vm323_vm7, %v841_v42  ;;  %v842_v21 = vmul.f32 %v1268_v43, %v814_v23 }
 0x96a   :  { %v1270_v11 = vpop.eup %1269  ;;  %v850_v10 = vmax.f32 %v848_v18, %v849_v19 }
 0x96b   :  { %846 = vst.msk [vmem:[#allocation10 + $0x10] sm:$0xff] %vm323_vm7, %v842_v21  ;;  %v843_v22 = vmul.f32 %v1270_v11, %v815_v29  ;;  %v857_v45 = vsel %vm323_vm7, %v842_v21, -inf }
 0x96c   :  { %v851_v44 = vrot.slane %v850_v10, 4 }
 0x96d   :  { %v858_v46 = vsel %vm323_vm7, %v843_v22, -inf  ;;  %847 = vst.msk [vmem:[#allocation10 + $0x18] sm:$0xff] %vm323_vm7, %v843_v22 }
 0x96e   :  { %v859_v47 = vmax.f32 %v857_v45, %v858_v46  ;;  %v852_v48 = vmax.f32 %v850_v10, %v851_v44 }
 0x970   :  { %v853_v49 = vrot.slane %v852_v48, 2  ;;  %v860_v50 = vrot.slane %v859_v47, 4 }
 0x972   :  { %v854_v51 = vmax.f32 %v852_v48, %v853_v49  ;;  %v861_v52 = vmax.f32 %v859_v47, %v860_v50 }
 0x974   :  { %v862_v53 = vrot.slane %v861_v52, 2  ;;  %v855_v54 = vrot.slane %v854_v51, 1 }
 0x976   :  { %v863_v55 = vmax.f32 %v861_v52, %v862_v53  ;;  %v856_v57 = vmax.f32 %v854_v51, %v855_v54 }
 0x978   :  { %v864_v56 = vrot.slane %v863_v55, 1 }
 0x97a   :  { %v865_v58 = vmax.f32 %v863_v55, %v864_v56 }
 0x97c   :  { %v880_v59 = vsel %vm879_vm13, %v865_v58, %v856_v57 }
 0x97d   :  { %1194 = vmatmul.mubr.msk.f32.vlgmr.msra.gmra.mrb[16].mxu1 %vm323_vm7, %v880_v59 }
 0xa50   :  { %v949_v63 = vpop.f32.mrb[16].mxu1 }
 0xa51   :  { %v950_v23 = vadd.f32 %v1090_v26, %v949_v63  ;;  %v1195_v0 = vpop.f32.mrb[17].mxu1 }
 0xa53   :  { %vm953_vm14 = vcmp.gt.f32.partialorder %v950_v23, 0.0  ;;  %v954_v30 = vmul.f32 0.2, %v950_v23 }
 0xa55   :  { %v955_v1 = vsel %vm953_vm14, %v950_v23, %v954_v30 }
 0xa56   :  { %1205 = vmatmul.mubr.msk.f32.vlgmr.msra.gmra.mrb[20].mxu0 %vm323_vm7, %v955_v1 }
 0xa57   :  { %1370 = shalt.err (!%p1367_p8)
}
 0xa58   :  { %s1371_s4 = scalar_lea.hbm %s1773_s12, 512 }
 0xa59   :  { %p1372_p9 = scmp.ne.s32.totalorder %s1773_s12, %s1371_s4  ;;  %p1375_p10 = scmp.lt.u32.totalorder %s1371_s4, %s1773_s12 }
 0xa5b   :  { %p1377_p11 = pnand %p1375_p10, %p1372_p9 }
 0xa5d   :  { %1380 = shalt.err (!%p1377_p11)
}
 0xa5e   :  { %1053 = dma.vmem_to_hbm [thread:$0]  %s1048_s1, 512, %s1773_s12, [#allocation4], %s1414_s18, %s1414_s18, %s1415_s19   ;;  %vm1040_vm15 = vcmask 254976  }
 0xa5f   :  { %v1092_v29 = vld [vmem:[%s1772_s11] ss:$0 sm:$0xff]  ;;  %s1423_s5 = smov [#allocation11]  }
 0xa60   :  { %s1060_s8 = sshll.u32 %s1423_s5, 4  ;;  %s1061_s8 = int_to_ptr.vmem [resolvable:$true] %s1060_s8 }
 0xa61   :  { %s1381_s25 = scalar_lea.vmem %s1061_s8, 32  ;;  %p1386_p13 = scmp.lt.s32.totalorder %s1061_s8, %s1061_s8 }
 0xa62   :  { %p1382_p12 = scmp.ne.s32.totalorder %s1061_s8, %s1381_s25  ;;  %p1387_p0 = scmp.lt.s32.totalorder %s1381_s25, %s1381_s25 }
 0xa64   :  { %p1388_p1 = por %p1387_p0, %p1386_p13 }
 0xa66   :  { %p1389_p2 = pnand %p1388_p1, %p1382_p12 }
 0xb29   :  { %v1036_v2 = vpop.f32.mrb[20].mxu0 }
 0xb2a   :  { %v1037_v3 = vadd.f32 %v1092_v29, %v1036_v2  ;;  %v1206_v4 = vpop.f32.mrb[21].mxu0 }
 0xb2c   :  { %1041 = vst.msk [vmem:[#allocation11] sm:$0x3] %vm1040_vm15, %v1037_v3 }
 0xb2d   :  { %1392 = shalt.err (!%p1389_p2)
}
 0xb2e   :  { %s1393_s19 = scalar_lea.hbm %s1774_s13, 32 }
 0xb2f   :  { %p1394_p3 = scmp.ne.s32.totalorder %s1774_s13, %s1393_s19  ;;  %p1397_p4 = scmp.lt.u32.totalorder %s1393_s19, %s1774_s13 }
 0xb31   :  { %p1399_p5 = pnand %p1397_p4, %p1394_p3 }
 0xb33   :  { %1402 = shalt.err (!%p1399_p5)
}
 0xb34   :  { %1063 = dma.vmem_to_hbm [thread:$0]  %s1061_s8, 32, %s1774_s13, [#allocation12]  }
 0xb35   :  { %1409 = dma.done.wait [#allocation4], 512  }
 0xb36   :  { %1410 = vsyncadd [#allocation4], 4294966784 }
 0xb37   :  { %1411 = dma.done.wait [#allocation12], 32  }
 0xb38   :  { %1412 = vsyncadd [#allocation12], 4294967264 }
 0xb39   :  { %1070 = vsyncpa [#allocation3], 1 }
 0xb3a   :  { %1071 = vsyncpa [#allocation6], 1 }
 0xb3b   :  { %1072 = vsyncpa [#allocation9], 1 }
 0xb3c   :  { %1073 = vsyncpa [#allocation4], 1 }
 0xb3d   :  { %1074 = vsyncpa [#allocation12], 1 }

</bundles_post_ra>
